<compile_context>
chip_gen: v7x
topology: tpu7x:2x2x1
jax: 0.10.0
libtpu: 0.0.40
codegen_flags: <defaults>
</compile_context>

<pallas_src>
import functools

import jax
import jax.numpy as jnp
from jax.experimental import pallas as pl
from jax.experimental.pallas import tpu as pltpu

HIDDEN_UNITS = 32
K1 = 8            # padded obs feature width / layer-1 K (>= in_features + 1 bias row)
LANES = 128       # layer-1 output width == layer-2 K == layer-2 output width
OUT_LANES = 8     # compressed output width: lanes [0:A)=log-probs, lane A=value, rest 0


def actor_critic_kernel(obs_ref, slab_ref, out_ref, *, in_features, hidden, num_actions):
    # obs_ref : (Bt, K1)        zero-padded obs (no ones column; bias added in-kernel)
    # slab_ref: (K1+LANES, 128) packed params:
    #            rows [0:K1)        = W1 block (actor cols 0:H | critic cols H:2H),
    #                                 row `in_features` = layer-1 biases + 1.0 carry @ 2H
    #            rows [K1:K1+LANES) = W2 block-diag (actor head | critic head),
    #                                 row 2H = layer-2 biases (picked up via the carry)
    # out_ref : (Bt, OUT_LANES)  lanes [0:A)=log-probs, lane A=value, rest 0
    obs = obs_ref[...]                                    # (Bt, K1) f32
    w1 = slab_ref[0:K1, :]                                # (K1, 128)  load, sublane-aligned
    w2 = slab_ref[K1:K1 + LANES, :]                       # (128, 128) load, sublane-aligned
    b1 = w1[in_features:in_features + 1, :]               # (1, 128) bias row + ones carry

    lane = jax.lax.broadcasted_iota(jnp.int32, (1, LANES), 1)   # (1,128); broadcasts over rows

    # ---- fused layer 1 (actor + critic), bias broadcast-add, tanh/relu lane select ----
    h = jnp.dot(obs, w1, preferred_element_type=jnp.float32) + b1          # (Bt, 128)
    h = jnp.where(lane < hidden, jnp.tanh(h), jnp.maximum(h, 0.0))
    # lane 2H carries relu(1.0) = 1.0 -> multiplies the layer-2 bias row of w2

    # ---- fused layer 2 (block-diagonal actor/critic + biases), one MXU pass ----
    out = jnp.dot(h, w2, preferred_element_type=jnp.float32)               # (Bt, 128)

    # ---- log_softmax over the first A lanes (masked reductions AND masked exp) ----
    amask = lane < num_actions                                             # (1, 128)
    neg_big = jnp.float32(-1e30)
    m = jnp.max(jnp.where(amask, out, neg_big), axis=-1, keepdims=True)
    se = jnp.sum(jnp.exp(jnp.where(amask, out - m, neg_big)), axis=-1, keepdims=True)
    logp = out - m - jnp.log(se)

    res = jnp.where(amask, logp, out)       # lanes [0:A)=logp, lane A=value, rest 0
    out_ref[...] = res[:, :OUT_LANES]       # compressed writeback (masked vst, 8 lanes)


def pack_params(p, in_features, hidden, out_features):
    """Pack all 8 weight/bias tensors into one (K1 + LANES, LANES) f32 slab."""
    F, H, A = in_features, hidden, out_features
    assert F + 1 <= K1, "in_features too large for packed layer-1 block"
    assert 2 * H + 1 <= LANES and A + 1 <= OUT_LANES

    w1 = jnp.zeros((K1, LANES), jnp.float32)
    w1 = w1.at[:F, :H].set(p["aw1"])                 # actor layer-1 weights
    w1 = w1.at[:F, H:2 * H].set(p["cw1"])            # critic layer-1 weights
    w1 = w1.at[F, :H].set(p["ab1"][0])               # actor bias (bias row, added in-kernel)
    w1 = w1.at[F, H:2 * H].set(p["cb1"][0])          # critic bias
    w1 = w1.at[F, 2 * H].set(1.0)                    # ones carry -> lane 2H of hidden

    w2 = jnp.zeros((LANES, LANES), jnp.float32)
    w2 = w2.at[:H, :A].set(p["aw2"])                 # actor head
    w2 = w2.at[H:2 * H, A].set(p["cw2"][:, 0])       # critic head (lane A)
    w2 = w2.at[2 * H, :A].set(p["ab2"][0])           # actor bias via ones-carry lane
    w2 = w2.at[2 * H, A].set(p["cb2"][0, 0])         # critic bias

    return jnp.concatenate([w1, w2], axis=0)         # (K1 + LANES, LANES)


def _round_up(x, m):
    return ((x + m - 1) // m) * m


def actor_critic_forward(obs, params, *, hidden=HIDDEN_UNITS, use_pallas=None):
    """obs: (B, F) float32. Returns (log_probs (B, A), value (B, 1))."""
    B, F = obs.shape
    A = params["aw2"].shape[1]
    obs = obs.astype(jnp.float32)

    if use_pallas is None:
        use_pallas = B >= 128            # tiny batches: pallas_call is pure fixed overhead
    if not use_pallas:
        return reference_forward(obs, params)

    assert F + 1 <= K1 and 2 * hidden + 1 <= LANES and A + 1 <= OUT_LANES

    # Batch tiling: amortize per-step overhead with 1K-2K-row tiles; keep >= 2 parallel
    # grid steps whenever B > 128 (both v7x TensorCores), >= 4 for large rollouts.
    if B <= 128:
        n_tiles = 1
    else:
        n_tiles = max(2, -(-B // 2048))
        if B >= 4096:
            n_tiles = max(n_tiles, 4)
    block_b = _round_up(-(-B // n_tiles), 8)          # <= 2048 -> well under any VMEM limit
    Bp = block_b * n_tiles

    obs_pad = jnp.pad(obs, ((0, Bp - B), (0, K1 - F)))   # single pad; bias handled in-kernel
    slab = pack_params(params, F, hidden, A)

    kern = functools.partial(actor_critic_kernel,
                             in_features=F, hidden=hidden, num_actions=A)
    out = pl.pallas_call(
        kern,
        out_shape=jax.ShapeDtypeStruct((Bp, OUT_LANES), jnp.float32),
        grid_spec=pltpu.PrefetchScalarGridSpec(
            num_scalar_prefetch=0,
            grid=(n_tiles,),
            in_specs=[
                pl.BlockSpec((block_b, K1), lambda i: (i, 0)),         # obs tile
                # constant index_map -> slab not re-fetched across grid steps (resident)
                pl.BlockSpec((K1 + LANES, LANES), lambda i: (0, 0)),
            ],
            out_specs=pl.BlockSpec((block_b, OUT_LANES), lambda i: (i, 0)),
        ),
        compiler_params=pltpu.CompilerParams(
            dimension_semantics=("parallel",)),
    )(obs_pad, slab)

    out = out[:B]
    return out[:, :A], out[:, A:A + 1]


def init_params(key, in_features, out_features, hidden=HIDDEN_UNITS):
    """Deterministic init mimicking torch.nn.Linear default (uniform +/- 1/sqrt(fan_in)).
    Weights stored as (in_dim, out_dim); biases as (1, out_dim)."""
    ks = jax.random.split(key, 8)

    def lin(kw, kb, fan_in, fan_out):
        bound = 1.0 / jnp.sqrt(jnp.float32(fan_in))
        w = jax.random.uniform(kw, (fan_in, fan_out), jnp.float32, -bound, bound)
        b = jax.random.uniform(kb, (1, fan_out), jnp.float32, -bound, bound)
        return w, b

    aw1, ab1 = lin(ks[0], ks[1], in_features, hidden)
    aw2, ab2 = lin(ks[2], ks[3], hidden, out_features)
    cw1, cb1 = lin(ks[4], ks[5], in_features, hidden)
    cw2, cb2 = lin(ks[6], ks[7], hidden, 1)
    return dict(aw1=aw1, ab1=ab1, aw2=aw2, ab2=ab2,
                cw1=cw1, cb1=cb1, cw2=cw2, cb2=cb2)


def reference_forward(obs, p):
    h_a = jnp.tanh(obs @ p["aw1"] + p["ab1"])
    logits = h_a @ p["aw2"] + p["ab2"]
    logp = jax.nn.log_softmax(logits, axis=-1)
    h_c = jax.nn.relu(obs @ p["cw1"] + p["cb1"])
    value = h_c @ p["cw2"] + p["cb2"]
    return logp, value


if __name__ == "__main__":
    # CartPole-like: obs dim 4, action dim 2.
    F, A = 4, 2
    key = jax.random.PRNGKey(0)
    k_obs1, k_obs2, k_par = jax.random.split(key, 3)
    params = init_params(k_par, F, A)

    # 1) Small inference batch, forced through the Pallas kernel (single 8-row tile).
    B1 = 8
    obs1 = jax.random.normal(k_obs1, (B1, F), jnp.float32)
    logp1, val1 = actor_critic_forward(obs1, params, use_pallas=True)
    jax.block_until_ready((logp1, val1))
    r_logp1, r_val1 = reference_forward(obs1, params)
    assert logp1.shape == (B1, A) and val1.shape == (B1, 1)
    assert jnp.allclose(logp1, r_logp1, atol=1e-4), "actor mismatch (small batch)"
    assert jnp.allclose(val1, r_val1, atol=1e-4), "critic mismatch (small batch)"

    # 2) Rollout-sized batch: exercises the 2-step parallel grid with 1024-row tiles.
    B2 = 2048
    obs2 = jax.random.normal(k_obs2, (B2, F), jnp.float32)
    logp2, val2 = actor_critic_forward(obs2, params)
    jax.block_until_ready((logp2, val2))
    r_logp2, r_val2 = reference_forward(obs2, params)
    assert logp2.shape == (B2, A) and val2.shape == (B2, 1)
    assert jnp.allclose(logp2, r_logp2, atol=1e-4), "actor mismatch (rollout batch)"
    assert jnp.allclose(val2, r_val2, atol=1e-4), "critic mismatch (rollout batch)"

    print("KERNEL_OK")
</pallas_src>

<mosaic_0001>
module attributes {stable_mosaic.version = 11 : i64} {
  func.func @actor_critic_kernel(%arg0: i32, %arg1: memref<8x8xf32, #tpu.memory_space<vmem>>, %arg2: memref<136x128xf32, #tpu.memory_space<vmem>>, %arg3: memref<8x8xf32, #tpu.memory_space<vmem>>) attributes {dimension_semantics = [#tpu.dimension_semantics<parallel>], iteration_bounds = array<i64: 1>, scalar_prefetch = 0 : i64, scratch_operands = 0 : i64, tpu.core_type = #tpu.core_type<tc>, window_params = [{transform_indices = @transform_0, window_bounds = array<i64: 8, 8>}, {pipeline_mode = #tpu.pipeline_mode<synchronous>, transform_indices = @transform_1, window_bounds = array<i64: 136, 128>}, {transform_indices = @transform_2, window_bounds = array<i64: 8, 8>}]} {
    %c0 = arith.constant 0 : index
    %c0_0 = arith.constant 0 : index
    %0 = vector.load %arg1[%c0, %c0_0] : memref<8x8xf32, #tpu.memory_space<vmem>>, vector<8x8xf32>
    %c0_1 = arith.constant 0 : index
    %c0_2 = arith.constant 0 : index
    %1 = vector.load %arg2[%c0_1, %c0_2] : memref<136x128xf32, #tpu.memory_space<vmem>>, vector<8x128xf32>
    %c8 = arith.constant 8 : index
    %c0_3 = arith.constant 0 : index
    %2 = vector.load %arg2[%c8, %c0_3] : memref<136x128xf32, #tpu.memory_space<vmem>>, vector<128x128xf32>
    %3 = vector.extract_strided_slice %1 {offsets = [4, 0], sizes = [1, 128], strides = [1, 1]} : vector<8x128xf32> to vector<1x128xf32>
    %4 = tpu.iota {dimensions = array<i32: 1>} : vector<1x128xi32>
    %cst = arith.constant dense<0.000000e+00> : vector<8x128xf32>
    %5 = tpu.matmul %0, %1, %cst {dimension_numbers = #tpu.dot_dimension_numbers<[1], [0], [0], [1], [0, 0, 1, 1], [], []>} : vector<8x8xf32>, vector<8x128xf32>, vector<8x128xf32> -> vector<8x128xf32>
    %6 = vector.broadcast %3 : vector<1x128xf32> to vector<8x128xf32>
    %7 = arith.addf %5, %6 : vector<8x128xf32>
    %c32_i32 = arith.constant 32 : i32
    %8 = vector.broadcast %c32_i32 : i32 to vector<1x128xi32>
    %9 = arith.cmpi slt, %4, %8 : vector<1x128xi32>
    %10 = math.tanh %7 : vector<8x128xf32>
    %cst_4 = arith.constant 0.000000e+00 : f32
    %11 = vector.broadcast %cst_4 : f32 to vector<8x128xf32>
    %12 = arith.maximumf %7, %11 : vector<8x128xf32>
    %13 = vector.shape_cast %9 : vector<1x128xi1> to vector<1x128xi1>
    %14 = vector.broadcast %13 : vector<1x128xi1> to vector<8x128xi1>
    %15 = arith.select %14, %10, %12 : vector<8x128xi1>, vector<8x128xf32>
    %cst_5 = arith.constant dense<0.000000e+00> : vector<8x128xf32>
    %16 = tpu.matmul %15, %2, %cst_5 {dimension_numbers = #tpu.dot_dimension_numbers<[1], [0], [0], [1], [0, 0, 1, 1], [], []>} : vector<8x128xf32>, vector<128x128xf32>, vector<8x128xf32> -> vector<8x128xf32>
    %c2_i32 = arith.constant 2 : i32
    %17 = vector.broadcast %c2_i32 : i32 to vector<1x128xi32>
    %18 = arith.cmpi slt, %4, %17 : vector<1x128xi32>
    %cst_6 = arith.constant -1.000000e+30 : f32
    %19 = vector.shape_cast %18 : vector<1x128xi1> to vector<1x128xi1>
    %20 = vector.broadcast %19 : vector<1x128xi1> to vector<8x128xi1>
    %21 = vector.broadcast %cst_6 : f32 to vector<8x128xf32>
    %22 = arith.select %20, %16, %21 : vector<8x128xi1>, vector<8x128xf32>
    %cst_7 = arith.constant dense<0xFF800000> : vector<8xf32>
    %23 = vector.multi_reduction <maximumf>, %22, %cst_7 [1] : vector<8x128xf32> to vector<8xf32>
    %24 = vector.shape_cast %23 : vector<8xf32> to vector<8x1xf32>
    %25 = vector.broadcast %24 : vector<8x1xf32> to vector<8x128xf32>
    %26 = arith.subf %16, %25 : vector<8x128xf32>
    %cst_8 = arith.constant -1.000000e+30 : f32
    %27 = vector.shape_cast %18 : vector<1x128xi1> to vector<1x128xi1>
    %28 = vector.broadcast %27 : vector<1x128xi1> to vector<8x128xi1>
    %29 = vector.broadcast %cst_8 : f32 to vector<8x128xf32>
    %30 = arith.select %28, %26, %29 : vector<8x128xi1>, vector<8x128xf32>
    %31 = math.exp %30 : vector<8x128xf32>
    %cst_9 = arith.constant dense<0.000000e+00> : vector<8xf32>
    %32 = vector.multi_reduction <add>, %31, %cst_9 [1] : vector<8x128xf32> to vector<8xf32>
    %33 = vector.shape_cast %32 : vector<8xf32> to vector<8x1xf32>
    %34 = vector.broadcast %24 : vector<8x1xf32> to vector<8x128xf32>
    %35 = arith.subf %16, %34 : vector<8x128xf32>
    %36 = math.log %33 : vector<8x1xf32>
    %37 = vector.broadcast %36 : vector<8x1xf32> to vector<8x128xf32>
    %38 = arith.subf %35, %37 : vector<8x128xf32>
    %39 = vector.shape_cast %18 : vector<1x128xi1> to vector<1x128xi1>
    %40 = vector.broadcast %39 : vector<1x128xi1> to vector<8x128xi1>
    %41 = arith.select %40, %38, %16 : vector<8x128xi1>, vector<8x128xf32>
    %42 = vector.extract_strided_slice %41 {offsets = [0, 0], sizes = [8, 8], strides = [1, 1]} : vector<8x128xf32> to vector<8x8xf32>
    %c0_10 = arith.constant 0 : index
    %c0_11 = arith.constant 0 : index
    %43 = vector.load %arg3[%c0_10, %c0_11] : memref<8x8xf32, #tpu.memory_space<vmem>>, vector<8x8xf32>
    tpu.vector_store %arg3[%c0_10, %c0_11], %42 {strides = array<i32>} : memref<8x8xf32, #tpu.memory_space<vmem>>, vector<8x8xf32>,
    return
  }
  func.func @transform_0(%arg0: i32) -> (i32, i32) {
    %c0_i32 = arith.constant 0 : i32
    %c0_i32_0 = arith.constant 0 : i32
    return %arg0, %c0_i32 : i32, i32
  }
  func.func @transform_1(%arg0: i32) -> (i32, i32) {
    %c0_i32 = arith.constant 0 : i32
    %c0_i32_0 = arith.constant 0 : i32
    %c0_i32_1 = arith.constant 0 : i32
    return %c0_i32, %c0_i32_0 : i32, i32
  }
  func.func @transform_2(%arg0: i32) -> (i32, i32) {
    %c0_i32 = arith.constant 0 : i32
    %c0_i32_0 = arith.constant 0 : i32
    return %arg0, %c0_i32 : i32, i32
  }
}

</mosaic_0001>

<bundles_post_ra>
// kernel: tpu_custom_call.1
= control target key start
LH: loop header
LB: loop body
LE: loop exit
PB: predicated region body
PF: predicated region fallthrough
CT: control target
= control target key end

     0   :  { %7 = vsyncpa [#allocation3], 0  ;;  %s486_s0 = inlined_call_operand.hbm [shape: f32[8,8], index: 0, kind: input, shape index: {}]   ;;  %s487_s1 = inlined_call_operand.hbm [shape: f32[136,128], index: 1, kind: input, shape index: {}]   ;;  %s488_s2 = inlined_call_operand.hbm [shape: f32[8,8], index: 2, kind: output, shape index: {}]  }
   0x1   :  { %8 = vsyncpa [#allocation6], 0 }
   0x2   :  { %9 = vsyncpa [#allocation4], 0  ;;  %s415_s9 = smov [#allocation2]   ;;  %s416_s11 = smov [#allocation5]  }
   0x3   :  { %s16_s10 = sshll.u32 %s415_s9, 4  ;;  %s25_s12 = sshll.u32 %s416_s11, 4  ;;  %s17_s10 = int_to_ptr.vmem [resolvable:$true] %s16_s10  ;;  %s438_s12 = int_to_ptr.vmem [resolvable:$true] %s25_s12 }
   0x4   :  { %s343_s15 = scalar_lea.hbm %s486_s0, 128 }
   0x5   :  { %p344_p0 = scmp.ne.s32.totalorder %s486_s0, %s343_s15  ;;  %p347_p1 = scmp.lt.u32.totalorder %s343_s15, %s486_s0 }
   0x7   :  { %p349_p2 = pnand %p347_p1, %p344_p0 }
   0x9   :  { %352 = shalt.err (!%p349_p2)
}
   0xa   :  { %s353_s20 = scalar_lea.vmem %s17_s10, 128  ;;  %p358_p4 = scmp.lt.s32.totalorder %s17_s10, %s17_s10 }
   0xb   :  { %p354_p3 = scmp.ne.s32.totalorder %s17_s10, %s353_s20  ;;  %p359_p5 = scmp.lt.s32.totalorder %s353_s20, %s353_s20 }
   0xd   :  { %p360_p6 = por %p359_p5, %p358_p4 }
   0xf   :  { %p361_p7 = pnand %p360_p6, %p354_p3 }
  0x11   :  { %364 = shalt.err (!%p361_p7)
}
  0x12   :  { %19 = dma.hbm_to_vmem [thread:$0]  %s486_s0, 128, %s17_s10, [#allocation3]  }
  0x13   :  { %s365_s25 = scalar_lea.hbm %s487_s1, 2176 }
  0x14   :  { %p366_p8 = scmp.ne.s32.totalorder %s487_s1, %s365_s25  ;;  %p369_p9 = scmp.lt.u32.totalorder %s365_s25, %s487_s1 }
  0x16   :  { %p371_p10 = pnand %p369_p9, %p366_p8 }
  0x18   :  { %374 = shalt.err (!%p371_p10)
}
  0x19   :  { %s375_s30 = scalar_lea.vmem %s438_s12, 2176  ;;  %p380_p12 = scmp.lt.s32.totalorder %s438_s12, %s438_s12 }
  0x1a   :  { %p376_p11 = scmp.ne.s32.totalorder %s438_s12, %s375_s30  ;;  %p381_p13 = scmp.lt.s32.totalorder %s375_s30, %s375_s30 }
  0x1c   :  { %p382_p0 = por %p381_p13, %p380_p12 }
  0x1e   :  { %p383_p1 = pnand %p382_p0, %p376_p11 }
  0x20   :  { %386 = shalt.err (!%p383_p1)
}
  0x21   :  { %s417_s0 = smov 128   ;;  %s418_s3 = smov 8  }
  0x22   :  { %31 = dma.hbm_to_vmem [thread:$0]  %s487_s1, 2176, %s438_s12, [#allocation6], %s417_s0, %s417_s0, %s418_s3  }
  0x23   :  { %409 = dma.done.wait [#allocation3], 128  }
  0x24   :  { %410 = vsyncadd [#allocation3], 4294967168 }
  0x25   :  { %411 = dma.done.wait [#allocation6], 2176  }
  0x26   :  { %412 = vsyncadd [#allocation6], 4294965120  ;;  %v419_v0 = vmov 0.0   ;;  %vm420_vm0 = vmmov 0   ;;  %v421_v1 = vmov 0.0|0.0   ;;  %vm62_vm1 = vcmask 64512  }
  0x27   :  { %265 = vmatprep.subr.mxu0 %v419_v0  ;;  %267 = vmatprep.mubr.msk.f32.mxu0 %vm420_vm0, %v419_v0  ;;  %v39_v2 = vld [vmem:[#allocation5] sm:$0xff]  ;;  %v38_v3 = vld [vmem:[#allocation2] sm:$0xff]  ;;  %v40_v4 = vld [vmem:[#allocation5 + $0x8] sm:$0xff]  ;;  %v56_v28 = vlaneseq  ;;  %s422_s1 = smov [#allocation7]  }
  0x28   :  { %305 = vmatprep.subr.bf16.mxu1 %v421_v1  ;;  %302 = vmatprep.mubr.msk.f32.mxu1 %vm420_vm0, %v419_v0  ;;  %v41_v5 = vld [vmem:[#allocation5 + $0x10] sm:$0xff]  ;;  %v42_v6 = vld [vmem:[#allocation5 + $0x18] sm:$0xff]  ;;  %v43_v7 = vld [vmem:[#allocation5 + $0x20] sm:$0xff]  ;;  %s235_s6 = sshll.u32 %s422_s1, 4  ;;  %s236_s6 = int_to_ptr.vmem [resolvable:$true] %s235_s6 }
  0x29   :  { %266 = vmatpush3.msra.mxu0 %v39_v2  ;;  %v306_v8 = vpack.c.bf16 %v41_v5, %v40_v4  ;;  %v309_v9 = vpack.c.bf16 %v43_v7, %v42_v6  ;;  %v44_v10 = vld [vmem:[#allocation5 + $0x28] sm:$0xff]  ;;  %v45_v11 = vld [vmem:[#allocation5 + $0x30] sm:$0xff]  ;;  %v46_v13 = vld [vmem:[#allocation5 + $0x38] sm:$0xff]  ;;  %v59_v29 = vshrl.u32 %v56_v28, 7  ;;  %v57_v35 = vand.u32 127, %v56_v28  ;;  %s387_s7 = scalar_lea.vmem %s236_s6, 128  ;;  %p392_p3 = scmp.lt.s32.totalorder %s236_s6, %s236_s6 }
  0x2a   :  { %268 = vmatmul.mubr.msk.f32.vlgmr.msra.gmra.mrb[0].mxu0 %vm62_vm1, %v38_v3  ;;  %v312_v12 = vpack.c.bf16 %v45_v11, %v44_v10  ;;  %v47_v14 = vld [vmem:[#allocation5 + $0x40] sm:$0xff]  ;;  %v48_v16 = vld [vmem:[#allocation5 + $0x48] sm:$0xff]  ;;  %v49_v17 = vld [vmem:[#allocation5 + $0x50] sm:$0xff]  ;;  %p388_p2 = scmp.ne.s32.totalorder %s236_s6, %s387_s7  ;;  %p393_p4 = scmp.lt.s32.totalorder %s387_s7, %s387_s7 }
  0x2b   :  { %307 = vmatpush3.bf16.msra.mxu1 %v306_v8  ;;  %v315_v15 = vpack.c.bf16 %v47_v14, %v46_v13  ;;  %v318_v18 = vpack.c.bf16 %v49_v17, %v48_v16  ;;  %v50_v19 = vld [vmem:[#allocation5 + $0x58] sm:$0xff]  ;;  %v51_v20 = vld [vmem:[#allocation5 + $0x60] sm:$0xff]  ;;  %v52_v22 = vld [vmem:[#allocation5 + $0x68] sm:$0xff]  ;;  %v60_v30 = vsub.s32 4, %v59_v29  ;;  %vm136_vm2 = vcmp.lt.s32.totalorder %v57_v35, 32 }
  0x2c   :  { %308 = vmatprep.subr.bf16.mxu1 %v421_v1  ;;  %v321_v21 = vpack.c.bf16 %v51_v20, %v50_v19  ;;  %v53_v23 = vld [vmem:[#allocation5 + $0x70] sm:$0xff]  ;;  %v54_v25 = vld [vmem:[#allocation5 + $0x78] sm:$0xff]  ;;  %v55_v26 = vld [vmem:[#allocation5 + $0x80] sm:$0xff]  ;;  %vm212_vm3 = vcmp.lt.s32.totalorder %v57_v35, 2  ;;  %p394_p5 = por %p393_p4, %p392_p3 }
  0x2d   :  { %v324_v24 = vpack.c.bf16 %v53_v23, %v52_v22  ;;  %v327_v27 = vpack.c.bf16 %v55_v26, %v54_v25  ;;  %v61_v31 = vrot.slane %v39_v2, %v60_v30 }
  0x2e   :  { %p395_p6 = pnand %p394_p5, %p388_p2 }
  0x2f   :  { %310 = vmatpush3.bf16.msra.mxu1 %v309_v9 }
  0x30   :  { %311 = vmatprep.subr.bf16.mxu1 %v421_v1 }
  0x33   :  { %313 = vmatpush3.bf16.msra.mxu1 %v312_v12 }
  0x34   :  { %314 = vmatprep.subr.bf16.mxu1 %v421_v1 }
  0x37   :  { %316 = vmatpush3.bf16.msra.mxu1 %v315_v15 }
  0x38   :  { %317 = vmatprep.subr.bf16.mxu1 %v421_v1 }
  0x3b   :  { %319 = vmatpush3.bf16.msra.mxu1 %v318_v18 }
  0x3c   :  { %320 = vmatprep.subr.bf16.mxu1 %v421_v1 }
  0x3f   :  { %322 = vmatpush3.bf16.msra.mxu1 %v321_v21 }
  0x40   :  { %323 = vmatprep.subr.bf16.mxu1 %v421_v1 }
  0x43   :  { %325 = vmatpush3.bf16.msra.mxu1 %v324_v24 }
  0x44   :  { %326 = vmatprep.subr.bf16.mxu1 %v421_v1 }
  0x47   :  { %328 = vmatpush3.bf16.msra.mxu1 %v327_v27 }
  0xfd   :  { %v132_v32 = vpop.f32.mrb[0].mxu0 }
  0xfe   :  { %v133_v33 = vadd.f32 %v132_v32, %v61_v31  ;;  %v269_v34 = vpop.f32.mrb[1].mxu0 }
 0x100   :  { %337 = vtanh.f32 %v133_v33  ;;  %v138_v36 = vmax.f32 %v133_v33, 0.0 }
 0x10a   :  { %v338_v37 = vpop.eup %337 }
 0x10b   :  { %v141_v38 = vsel %vm136_vm2, %v338_v37, %v138_v36 }
 0x10c   :  { %303 = vmatmul.mubr.f32.vlgmr.msra.gmra.mrb[0].mxu1 %v141_v38 }
 0x1df   :  { %v208_v39 = vpop.f32.mrb[0].mxu1 }
 0x1e0   :  { %v304_v40 = vpop.f32.mrb[1].mxu1  ;;  %v215_v41 = vsel %vm212_vm3, %v208_v39, -1e+30 }
 0x1e1   :  { %216 = vmax.xlane.f32.xlu0 %v215_v41 }
 0x26e   :  { %v217_v42 = vpop.xlane.xlu0 %216 }
 0x26f   :  { %v218_v43 = vsub.f32 %v208_v39, %v217_v42 }
 0x271   :  { %v219_v44 = vsel %vm212_vm3, %v218_v43, -1e+30 }
 0x272   :  { %v220_v45 = vmul.f32 1.442695, %v219_v44 }
 0x274   :  { %339 = vpow2.f32 %v220_v45 }
 0x27e   :  { %v340_v46 = vpop.eup %339 }
 0x27f   :  { %222 = vadd.xlane.f32.xlu0 %v340_v46 }
 0x30c   :  { %v223_v47 = vpop.xlane.xlu0 %222 }
 0x30d   :  { %341 = vlog2.f32 %v223_v47 }
 0x317   :  { %v342_v48 = vpop.eup %341 }
 0x318   :  { %v225_v49 = vmul.f32 0.6931472, %v342_v48 }
 0x31a   :  { %v226_v50 = vsub.f32 %v218_v43, %v225_v49 }
 0x31c   :  { %v227_v51 = vsel %vm212_vm3, %v226_v50, %v208_v39 }
 0x31d   :  { %228 = vst.msk [vmem:[#allocation7] sm:$0xff] %vm62_vm1, %v227_v51 }
 0x31e   :  { %398 = shalt.err (!%p395_p6)
}
 0x31f   :  { %s399_s10 = scalar_lea.hbm %s488_s2, 128 }
 0x320   :  { %p400_p7 = scmp.ne.s32.totalorder %s488_s2, %s399_s10  ;;  %p403_p8 = scmp.lt.u32.totalorder %s399_s10, %s488_s2 }
 0x322   :  { %p405_p9 = pnand %p403_p8, %p400_p7 }
 0x324   :  { %408 = shalt.err (!%p405_p9)
}
 0x325   :  { %238 = dma.vmem_to_hbm [thread:$0]  %s236_s6, 128, %s488_s2, [#allocation4]  }
 0x326   :  { %413 = dma.done.wait [#allocation4], 128  }
 0x327   :  { %414 = vsyncadd [#allocation4], 4294967168 }
 0x328   :  { %242 = vsyncpa [#allocation3], 1 }
 0x329   :  { %243 = vsyncpa [#allocation6], 1 }
 0x32a   :  { %244 = vsyncpa [#allocation4], 1 }

</bundles_post_ra>
